<compile_context>
chip_gen: v6e
topology: v6e:2x2x1
jax: 0.10.0
libtpu: 0.0.40
codegen_flags: <defaults>
</compile_context>

<pallas_src>
import functools

import jax
import jax.numpy as jnp
from jax.experimental import pallas as pl
from jax.experimental.pallas import tpu as pltpu

LEAKY_SLOPE = 0.01  # nn.LeakyReLU default negative_slope
LANE = 128


def _leaky_relu(x):
    return jnp.where(x > 0, x, LEAKY_SLOPE * x)


def _round_up(x, m):
    return (x + m - 1) // m * m


def _pad_to(a, shape):
    pads = [(0, t - s) for s, t in zip(a.shape, shape)]
    if all(p == (0, 0) for p in pads):
        return a
    return jnp.pad(a, pads)


def deep_mlp_kernel(x_ref, w1_ref, b1_ref, w2_ref, b2_ref, wo_ref, bo_ref, o_ref):
    """Dense tower: (Linear+LeakyReLU) x 2 -> Linear(out), one batch tile.

    x tile and weights are bf16 (MXU), accumulation / bias / LeakyReLU in f32.
    All operand lane dims are padded to 128, so every load/store is unmasked.
    """
    h = jnp.dot(x_ref[...], w1_ref[...], preferred_element_type=jnp.float32)
    h = _leaky_relu(h + b1_ref[...])
    # Dropout / BatchNorm1d omitted (p=0.0, batchnorm=False at forward).
    h = jnp.dot(h.astype(jnp.bfloat16), w2_ref[...],
                preferred_element_type=jnp.float32)
    h = _leaky_relu(h + b2_ref[...])
    o = jnp.dot(h.astype(jnp.bfloat16), wo_ref[...],
                preferred_element_type=jnp.float32)
    o_ref[...] = o + bo_ref[...]


@jax.jit
def _deep_mlp(x, w1, b1, w2, b2, wo, bo):
    """Pad to lane-/tile-aligned shapes, run the batch-tiled Pallas MLP."""
    B, D = x.shape
    H1 = w1.shape[1]
    H2 = w2.shape[1]
    O = wo.shape[1]

    D_p = _round_up(D, LANE)
    H1_p = _round_up(H1, LANE)
    H2_p = _round_up(H2, LANE)
    O_p = _round_up(O, LANE)

    # Batch tile: large enough to amortize per-step overhead, multiple of 16
    # (bf16 sublane packing); small batches collapse to a single tile.
    TB = min(512, _round_up(B, 16))
    B_p = _round_up(B, TB)
    grid = B_p // TB

    x_p = _pad_to(x, (B_p, D_p)).astype(jnp.bfloat16)
    w1_p = _pad_to(w1, (D_p, H1_p)).astype(jnp.bfloat16)
    w2_p = _pad_to(w2, (H1_p, H2_p)).astype(jnp.bfloat16)
    wo_p = _pad_to(wo, (H2_p, O_p)).astype(jnp.bfloat16)
    b1_p = _pad_to(b1, (1, H1_p)).astype(jnp.float32)
    b2_p = _pad_to(b2, (1, H2_p)).astype(jnp.float32)
    bo_p = _pad_to(bo, (1, O_p)).astype(jnp.float32)

    res = pl.pallas_call(
        deep_mlp_kernel,
        out_shape=jax.ShapeDtypeStruct((B_p, O_p), jnp.float32),
        grid_spec=pl.GridSpec(
            grid=(grid,),
            in_specs=[
                pl.BlockSpec((TB, D_p), lambda i: (i, 0)),     # x: tiled over batch
                pl.BlockSpec((D_p, H1_p), lambda i: (0, 0)),   # weights/biases:
                pl.BlockSpec((1, H1_p), lambda i: (0, 0)),     # constant block idx
                pl.BlockSpec((H1_p, H2_p), lambda i: (0, 0)),  # -> VMEM resident
                pl.BlockSpec((1, H2_p), lambda i: (0, 0)),
                pl.BlockSpec((H2_p, O_p), lambda i: (0, 0)),
                pl.BlockSpec((1, O_p), lambda i: (0, 0)),
            ],
            out_specs=pl.BlockSpec((TB, O_p), lambda i: (i, 0)),
        ),
        compiler_params=pltpu.CompilerParams(
            dimension_semantics=("parallel",),      # shard batch grid across TCs (v7x)
            vmem_limit_bytes=32 * 1024 * 1024,      # explicit limit, safe on v7x's 64 MiB
        ),
    )(x_p, w1_p, b1_p, w2_p, b2_p, wo_p, bo_p)

    return res[:B, :O]


def deep_forward(X, params):
    """Full Deep.forward: embedding lookups + concat (glue) + Pallas MLP."""
    emb_tables = params["emb_tables"]          # list of (vocab, dim) tables
    emb_col_idx = params["emb_col_idx"]        # column index per embedding
    cont_col_idx = params["cont_col_idx"]      # continuous column indices

    # --- glue: embedding gathers + concat (matches torch.cat(..., 1)) ---
    emb_outs = []
    for tbl, col in zip(emb_tables, emb_col_idx):
        ids = X[:, col].astype(jnp.int32)
        emb_outs.append(jnp.take(tbl, ids, axis=0))
    x_emb = jnp.concatenate(emb_outs, axis=1)
    x_cont = X[:, jnp.array(cont_col_idx)].astype(jnp.float32)
    x = jnp.concatenate([x_emb, x_cont], axis=1)          # (B, input_dim)

    return _deep_mlp(x, params["w1"], params["b1"],
                     params["w2"], params["b2"],
                     params["wo"], params["bo"])


def init_params(key):
    """Deterministic parameter init mirroring Deep.__init__ shapes."""
    # embed_input = [(col, vocab, dim)]
    embed_input = [("cat_a", 10, 4), ("cat_b", 8, 4), ("cat_c", 6, 8)]
    continuous_cols = ["cont_0", "cont_1", "cont_2", "cont_3"]
    # deep_column_idx: categorical cols 0..2, continuous cols 3..6
    emb_col_idx = [0, 1, 2]
    cont_col_idx = [3, 4, 5, 6]

    emb_inp_dim = sum(d for _, _, d in embed_input)        # 16
    cont_inp_dim = len(continuous_cols)                     # 4
    input_dim = emb_inp_dim + cont_inp_dim                  # 20
    hidden_layers = [32, 16]
    output_dim = 1

    keys = jax.random.split(key, 16)
    ki = iter(keys)

    def lin(kw, kb, fan_in, fan_out):
        bound = 1.0 / jnp.sqrt(fan_in)
        w = jax.random.uniform(kw, (fan_in, fan_out), jnp.float32, -bound, bound)
        b = jax.random.uniform(kb, (1, fan_out), jnp.float32, -bound, bound)
        return w, b

    emb_tables = [
        jax.random.normal(next(ki), (vocab, dim), jnp.float32)
        for _, vocab, dim in embed_input
    ]
    w1, b1 = lin(next(ki), next(ki), input_dim, hidden_layers[0])
    w2, b2 = lin(next(ki), next(ki), hidden_layers[0], hidden_layers[1])
    wo, bo = lin(next(ki), next(ki), hidden_layers[1], output_dim)

    params = dict(
        emb_tables=emb_tables,
        emb_col_idx=emb_col_idx,
        cont_col_idx=cont_col_idx,
        w1=w1, b1=b1, w2=w2, b2=b2, wo=wo, bo=bo,
    )
    meta = dict(embed_input=embed_input, n_cols=len(emb_col_idx) + len(cont_col_idx))
    return params, meta


def reference_forward(X, params):
    """Pure-JAX f32 reference for a sanity check."""
    emb_outs = [
        jnp.take(tbl, X[:, col].astype(jnp.int32), axis=0)
        for tbl, col in zip(params["emb_tables"], params["emb_col_idx"])
    ]
    x = jnp.concatenate(
        emb_outs + [X[:, jnp.array(params["cont_col_idx"])].astype(jnp.float32)], axis=1
    )
    h = _leaky_relu(x @ params["w1"] + params["b1"])
    h = _leaky_relu(h @ params["w2"] + params["b2"])
    return h @ params["wo"] + params["bo"]


if __name__ == "__main__":
    key = jax.random.PRNGKey(0)
    params, meta = init_params(key)

    batch = 8
    kcat, kcont = jax.random.split(jax.random.PRNGKey(1))
    # categorical columns (as float values, like a mixed-type tabular tensor)
    cat_cols = jnp.stack(
        [
            jax.random.randint(jax.random.fold_in(kcat, i), (batch,), 0, vocab)
            for i, (_, vocab, _) in enumerate(meta["embed_input"])
        ],
        axis=1,
    ).astype(jnp.float32)
    cont_cols = jax.random.normal(kcont, (batch, 4), jnp.float32)
    X = jnp.concatenate([cat_cols, cont_cols], axis=1)      # (8, 7)

    out = deep_forward(X, params)
    out = jax.block_until_ready(out)

    ref = reference_forward(X, params)
    assert out.shape == (batch, 1), out.shape
    # bf16 MXU inputs with f32 accumulation -> compare vs f32 ref with bf16-level tolerance
    assert jnp.allclose(out, ref, atol=3e-2, rtol=3e-2), "mismatch vs reference"

    print("KERNEL_OK")
</pallas_src>

<mosaic_0001>
module attributes {stable_mosaic.version = 11 : i64} {
  func.func @deep_mlp_kernel(%arg0: i32, %arg1: memref<16x128xbf16, #tpu.memory_space<vmem>>, %arg2: memref<128x128xbf16, #tpu.memory_space<vmem>>, %arg3: memref<1x128xf32, #tpu.memory_space<vmem>>, %arg4: memref<128x128xbf16, #tpu.memory_space<vmem>>, %arg5: memref<1x128xf32, #tpu.memory_space<vmem>>, %arg6: memref<128x128xbf16, #tpu.memory_space<vmem>>, %arg7: memref<1x128xf32, #tpu.memory_space<vmem>>, %arg8: memref<16x128xf32, #tpu.memory_space<vmem>>) attributes {dimension_semantics = [#tpu.dimension_semantics<parallel>], iteration_bounds = array<i64: 1>, scalar_prefetch = 0 : i64, scratch_operands = 0 : i64, tpu.core_type = #tpu.core_type<tc>, window_params = [{transform_indices = @transform_0, window_bounds = array<i64: 16, 128>}, {pipeline_mode = #tpu.pipeline_mode<synchronous>, transform_indices = @transform_1, window_bounds = array<i64: 128, 128>}, {pipeline_mode = #tpu.pipeline_mode<synchronous>, transform_indices = @transform_2, window_bounds = array<i64: 1, 128>}, {pipeline_mode = #tpu.pipeline_mode<synchronous>, transform_indices = @transform_3, window_bounds = array<i64: 128, 128>}, {pipeline_mode = #tpu.pipeline_mode<synchronous>, transform_indices = @transform_4, window_bounds = array<i64: 1, 128>}, {pipeline_mode = #tpu.pipeline_mode<synchronous>, transform_indices = @transform_5, window_bounds = array<i64: 128, 128>}, {pipeline_mode = #tpu.pipeline_mode<synchronous>, transform_indices = @transform_6, window_bounds = array<i64: 1, 128>}, {transform_indices = @transform_7, window_bounds = array<i64: 16, 128>}]} {
    %c0 = arith.constant 0 : index
    %c0_0 = arith.constant 0 : index
    %0 = vector.load %arg1[%c0, %c0_0] : memref<16x128xbf16, #tpu.memory_space<vmem>>, vector<16x128xbf16>
    %c0_1 = arith.constant 0 : index
    %c0_2 = arith.constant 0 : index
    %1 = vector.load %arg2[%c0_1, %c0_2] : memref<128x128xbf16, #tpu.memory_space<vmem>>, vector<128x128xbf16>
    %cst = arith.constant dense<0.000000e+00> : vector<16x128xf32>
    %2 = tpu.matmul %0, %1, %cst {dimension_numbers = #tpu.dot_dimension_numbers<[1], [0], [0], [1], [0, 0, 1, 1], [], []>} : vector<16x128xbf16>, vector<128x128xbf16>, vector<16x128xf32> -> vector<16x128xf32>
    %c0_3 = arith.constant 0 : index
    %c0_4 = arith.constant 0 : index
    %3 = vector.load %arg3[%c0_3, %c0_4] : memref<1x128xf32, #tpu.memory_space<vmem>>, vector<1x128xf32>
    %4 = vector.broadcast %3 : vector<1x128xf32> to vector<16x128xf32>
    %5 = arith.addf %2, %4 : vector<16x128xf32>
    %cst_5 = arith.constant 0.000000e+00 : f32
    %6 = vector.broadcast %cst_5 : f32 to vector<16x128xf32>
    %7 = arith.cmpf ogt, %5, %6 : vector<16x128xf32>
    %cst_6 = arith.constant 0.00999999977 : f32
    %8 = vector.broadcast %cst_6 : f32 to vector<16x128xf32>
    %9 = arith.mulf %8, %5 : vector<16x128xf32>
    %10 = arith.select %7, %5, %9 : vector<16x128xi1>, vector<16x128xf32>
    %11 = arith.truncf %10 : vector<16x128xf32> to vector<16x128xbf16>
    %c0_7 = arith.constant 0 : index
    %c0_8 = arith.constant 0 : index
    %12 = vector.load %arg4[%c0_7, %c0_8] : memref<128x128xbf16, #tpu.memory_space<vmem>>, vector<128x128xbf16>
    %cst_9 = arith.constant dense<0.000000e+00> : vector<16x128xf32>
    %13 = tpu.matmul %11, %12, %cst_9 {dimension_numbers = #tpu.dot_dimension_numbers<[1], [0], [0], [1], [0, 0, 1, 1], [], []>} : vector<16x128xbf16>, vector<128x128xbf16>, vector<16x128xf32> -> vector<16x128xf32>
    %c0_10 = arith.constant 0 : index
    %c0_11 = arith.constant 0 : index
    %14 = vector.load %arg5[%c0_10, %c0_11] : memref<1x128xf32, #tpu.memory_space<vmem>>, vector<1x128xf32>
    %15 = vector.broadcast %14 : vector<1x128xf32> to vector<16x128xf32>
    %16 = arith.addf %13, %15 : vector<16x128xf32>
    %cst_12 = arith.constant 0.000000e+00 : f32
    %17 = vector.broadcast %cst_12 : f32 to vector<16x128xf32>
    %18 = arith.cmpf ogt, %16, %17 : vector<16x128xf32>
    %cst_13 = arith.constant 0.00999999977 : f32
    %19 = vector.broadcast %cst_13 : f32 to vector<16x128xf32>
    %20 = arith.mulf %19, %16 : vector<16x128xf32>
    %21 = arith.select %18, %16, %20 : vector<16x128xi1>, vector<16x128xf32>
    %22 = arith.truncf %21 : vector<16x128xf32> to vector<16x128xbf16>
    %c0_14 = arith.constant 0 : index
    %c0_15 = arith.constant 0 : index
    %23 = vector.load %arg6[%c0_14, %c0_15] : memref<128x128xbf16, #tpu.memory_space<vmem>>, vector<128x128xbf16>
    %cst_16 = arith.constant dense<0.000000e+00> : vector<16x128xf32>
    %24 = tpu.matmul %22, %23, %cst_16 {dimension_numbers = #tpu.dot_dimension_numbers<[1], [0], [0], [1], [0, 0, 1, 1], [], []>} : vector<16x128xbf16>, vector<128x128xbf16>, vector<16x128xf32> -> vector<16x128xf32>
    %c0_17 = arith.constant 0 : index
    %c0_18 = arith.constant 0 : index
    %25 = vector.load %arg7[%c0_17, %c0_18] : memref<1x128xf32, #tpu.memory_space<vmem>>, vector<1x128xf32>
    %26 = vector.broadcast %25 : vector<1x128xf32> to vector<16x128xf32>
    %27 = arith.addf %24, %26 : vector<16x128xf32>
    %c0_19 = arith.constant 0 : index
    %c0_20 = arith.constant 0 : index
    %28 = vector.load %arg8[%c0_19, %c0_20] : memref<16x128xf32, #tpu.memory_space<vmem>>, vector<16x128xf32>
    tpu.vector_store %arg8[%c0_19, %c0_20], %27 {strides = array<i32>} : memref<16x128xf32, #tpu.memory_space<vmem>>, vector<16x128xf32>,
    return
  }
  func.func @transform_0(%arg0: i32) -> (i32, i32) {
    %c0_i32 = arith.constant 0 : i32
    %c0_i32_0 = arith.constant 0 : i32
    return %arg0, %c0_i32 : i32, i32
  }
  func.func @transform_1(%arg0: i32) -> (i32, i32) {
    %c0_i32 = arith.constant 0 : i32
    %c0_i32_0 = arith.constant 0 : i32
    %c0_i32_1 = arith.constant 0 : i32
    return %c0_i32, %c0_i32_0 : i32, i32
  }
  func.func @transform_2(%arg0: i32) -> (i32, i32) {
    %c0_i32 = arith.constant 0 : i32
    %c0_i32_0 = arith.constant 0 : i32
    %c0_i32_1 = arith.constant 0 : i32
    return %c0_i32, %c0_i32_0 : i32, i32
  }
  func.func @transform_3(%arg0: i32) -> (i32, i32) {
    %c0_i32 = arith.constant 0 : i32
    %c0_i32_0 = arith.constant 0 : i32
    %c0_i32_1 = arith.constant 0 : i32
    return %c0_i32, %c0_i32_0 : i32, i32
  }
  func.func @transform_4(%arg0: i32) -> (i32, i32) {
    %c0_i32 = arith.constant 0 : i32
    %c0_i32_0 = arith.constant 0 : i32
    %c0_i32_1 = arith.constant 0 : i32
    return %c0_i32, %c0_i32_0 : i32, i32
  }
  func.func @transform_5(%arg0: i32) -> (i32, i32) {
    %c0_i32 = arith.constant 0 : i32
    %c0_i32_0 = arith.constant 0 : i32
    %c0_i32_1 = arith.constant 0 : i32
    return %c0_i32, %c0_i32_0 : i32, i32
  }
  func.func @transform_6(%arg0: i32) -> (i32, i32) {
    %c0_i32 = arith.constant 0 : i32
    %c0_i32_0 = arith.constant 0 : i32
    %c0_i32_1 = arith.constant 0 : i32
    return %c0_i32, %c0_i32_0 : i32, i32
  }
  func.func @transform_7(%arg0: i32) -> (i32, i32) {
    %c0_i32 = arith.constant 0 : i32
    %c0_i32_0 = arith.constant 0 : i32
    return %arg0, %c0_i32 : i32, i32
  }
}

</mosaic_0001>

<bundles_post_ra>
// kernel: _deep_mlp.1
= control target key start
LH: loop header
LB: loop body
LE: loop exit
PB: predicated region body
PF: predicated region fallthrough
CT: control target
= control target key end

     0   :  { %v533_v0 = vmov 0.0   ;;  %vm534_vm0 = vmmov 0   ;;  %s695_s1 = inlined_call_operand.vmem [shape: bf16[128,128], index: 1, kind: input, shape index: {}]   ;;  %s696_s3 = inlined_call_operand.vmem [shape: bf16[128,128], index: 3, kind: input, shape index: {}]   ;;  %s697_s0 = inlined_call_operand.vmem [shape: bf16[16,128], index: 0, kind: input, shape index: {}]   ;;  %s698_s5 = inlined_call_operand.vmem [shape: bf16[128,128], index: 5, kind: input, shape index: {}]   ;;  %s699_s2 = inlined_call_operand.vmem [shape: f32[1,128], index: 2, kind: input, shape index: {}]   ;;  %s700_s4 = inlined_call_operand.vmem [shape: f32[1,128], index: 4, kind: input, shape index: {}]   ;;  %s701_s6 = inlined_call_operand.vmem [shape: f32[1,128], index: 6, kind: input, shape index: {}]   ;;  %s702_s7 = inlined_call_operand.vmem [shape: f32[16,128], index: 7, kind: output, shape index: {}]  }
   0x1   :  { %446 = vmatprep.subr.bf16.mxu0 %v533_v0  ;;  %v508_v1 = vld [vmem:[%s695_s1 + $0x38] sm:$0xff]   ;;  %462 = vmatprep.mubr.msk.bf16.mxu0 %vm534_vm0, %v533_v0  ;;  %v509_v2 = vld [vmem:[%s695_s1 + $0x30] sm:$0xff]   ;;  %v510_v3 = vld [vmem:[%s695_s1 + $0x28] sm:$0xff]  }
   0x2   :  { %466 = vmatprep.subr.bf16.mxu1 %v533_v0  ;;  %482 = vmatprep.mubr.msk.bf16.mxu1 %vm534_vm0, %v533_v0  ;;  %v517_v4 = vld [vmem:[%s696_s3 + $0x38] sm:$0xff]   ;;  %v511_v5 = vld [vmem:[%s695_s1 + $0x20] sm:$0xff]   ;;  %v518_v6 = vld [vmem:[%s696_s3 + $0x30] sm:$0xff]  }
   0x3   :  { %447 = vmatpush3.bf16.msra.mxu0 %v508_v1  ;;  %467 = vmatpush3.bf16.msra.mxu1 %v517_v4  ;;  %v512_v7 = vld [vmem:[%s695_s1 + $0x18] sm:$0xff]   ;;  %v519_v8 = vld [vmem:[%s696_s3 + $0x28] sm:$0xff]   ;;  %v513_v9 = vld [vmem:[%s695_s1 + $0x10] sm:$0xff]  }
   0x4   :  { %448 = vmatprep.subr.bf16.mxu0 %v533_v0  ;;  %468 = vmatprep.subr.bf16.mxu1 %v533_v0  ;;  %v520_v10 = vld [vmem:[%s696_s3 + $0x20] sm:$0xff]   ;;  %v514_v11 = vld [vmem:[%s695_s1 + $0x8] sm:$0xff]   ;;  %v521_v12 = vld [vmem:[%s696_s3 + $0x18] sm:$0xff]  }
   0x5   :  { %v515_v13 = vld [vmem:[%s695_s1] sm:$0xff]   ;;  %v522_v15 = vld [vmem:[%s696_s3 + $0x10] sm:$0xff]   ;;  %v523_v16 = vld [vmem:[%s696_s3 + $0x8] sm:$0xff]  }
   0x6   :  { %v516_v14 = vld [vmem:[%s697_s0] sm:$0xff]   ;;  %v525_v18 = vld [vmem:[%s698_s5 + $0x38] sm:$0xff]   ;;  %v526_v19 = vld [vmem:[%s698_s5 + $0x30] sm:$0xff]  }
   0x7   :  { %449 = vmatpush3.bf16.msra.mxu0 %v509_v2  ;;  %469 = vmatpush3.bf16.msra.mxu1 %v518_v6  ;;  %v524_v17 = vld [vmem:[%s696_s3] sm:$0xff]   ;;  %v527_v20 = vld [vmem:[%s698_s5 + $0x28] sm:$0xff]   ;;  %v529_v22 = vld [vmem:[%s698_s5 + $0x18] sm:$0xff]  }
   0x8   :  { %450 = vmatprep.subr.bf16.mxu0 %v533_v0  ;;  %470 = vmatprep.subr.bf16.mxu1 %v533_v0  ;;  %v528_v21 = vld [vmem:[%s698_s5 + $0x20] sm:$0xff]   ;;  %v530_v35 = vld [vmem:[%s698_s5 + $0x10] sm:$0xff]   ;;  %v531_v36 = vld [vmem:[%s698_s5 + $0x8] sm:$0xff]  }
   0x9   :  { %v391_v23 = vld [vmem:[%s699_s2] ss:$0 sm:$0xff] }
   0xa   :  { %v532_v37 = vld [vmem:[%s698_s5] sm:$0xff]  }
   0xb   :  { %451 = vmatpush3.bf16.msra.mxu0 %v510_v3  ;;  %471 = vmatpush3.bf16.msra.mxu1 %v519_v8  ;;  %v401_v38 = vld [vmem:[%s700_s4] ss:$0 sm:$0xff] }
   0xc   :  { %452 = vmatprep.subr.bf16.mxu0 %v533_v0  ;;  %472 = vmatprep.subr.bf16.mxu1 %v533_v0  ;;  %v410_v50 = vld [vmem:[%s701_s6] ss:$0 sm:$0xff] }
   0xf   :  { %453 = vmatpush3.bf16.msra.mxu0 %v511_v5  ;;  %473 = vmatpush3.bf16.msra.mxu1 %v520_v10 }
  0x10   :  { %454 = vmatprep.subr.bf16.mxu0 %v533_v0  ;;  %474 = vmatprep.subr.bf16.mxu1 %v533_v0 }
  0x13   :  { %455 = vmatpush3.bf16.msra.mxu0 %v512_v7  ;;  %475 = vmatpush3.bf16.msra.mxu1 %v521_v12 }
  0x14   :  { %456 = vmatprep.subr.bf16.mxu0 %v533_v0  ;;  %476 = vmatprep.subr.bf16.mxu1 %v533_v0 }
  0x17   :  { %457 = vmatpush3.bf16.msra.mxu0 %v513_v9  ;;  %477 = vmatpush3.bf16.msra.mxu1 %v522_v15 }
  0x18   :  { %458 = vmatprep.subr.bf16.mxu0 %v533_v0  ;;  %478 = vmatprep.subr.bf16.mxu1 %v533_v0 }
  0x1b   :  { %459 = vmatpush3.bf16.msra.mxu0 %v514_v11  ;;  %479 = vmatpush3.bf16.msra.mxu1 %v523_v16 }
  0x1c   :  { %460 = vmatprep.subr.bf16.mxu0 %v533_v0  ;;  %480 = vmatprep.subr.bf16.mxu1 %v533_v0 }
  0x1f   :  { %461 = vmatpush3.bf16.msra.mxu0 %v515_v13  ;;  %481 = vmatpush3.bf16.msra.mxu1 %v524_v17 }
  0x20   :  { %486 = vmatprep.subr.bf16.mxu0 %v533_v0 }
  0x22   :  { %463 = vmatmul.mubr.bf16.vlgmr.msra.gmra.mxu0 %v516_v14 }
  0x23   :  { %502 = vmatprep.mubr.msk.bf16.mxu0 %vm534_vm0, %v533_v0  ;;  %487 = vmatpush3.bf16.msra.mxu0 %v525_v18 }
  0x24   :  { %488 = vmatprep.subr.bf16.mxu0 %v533_v0 }
  0x27   :  { %489 = vmatpush3.bf16.msra.mxu0 %v526_v19 }
  0x28   :  { %490 = vmatprep.subr.bf16.mxu0 %v533_v0 }
  0x2b   :  { %491 = vmatpush3.bf16.msra.mxu0 %v527_v20 }
  0x2c   :  { %492 = vmatprep.subr.bf16.mxu0 %v533_v0 }
  0x2f   :  { %493 = vmatpush3.bf16.msra.mxu0 %v528_v21 }
  0x30   :  { %494 = vmatprep.subr.bf16.mxu0 %v533_v0 }
  0x33   :  { %495 = vmatpush3.bf16.msra.mxu0 %v529_v22 }
  0x34   :  { %496 = vmatprep.subr.bf16.mxu0 %v533_v0 }
  0x37   :  { %497 = vmatpush3.bf16.msra.mxu0 %v530_v35 }
  0x38   :  { %498 = vmatprep.subr.bf16.mxu0 %v533_v0 }
  0x3b   :  { %499 = vmatpush3.bf16.msra.mxu0 %v531_v36 }
  0x3c   :  { %500 = vmatprep.subr.bf16.mxu0 %v533_v0 }
  0x3f   :  { %501 = vmatpush3.bf16.msra.mxu0 %v532_v37 }
  0xe2   :  { %v140_v24 = vpop.f32.mrf.mxu0 }
  0xe3   :  { %v141_v25 = vadd.f32 %v391_v23, %v140_v24 }
  0xe4   :  { %v464_v26 = vpop.f32.mrf.mxu0 }
  0xe5   :  { %v149_v28 = vmul.f32 0.01, %v141_v25  ;;  %vm147_vm1 = vcmp.gt.f32.partialorder %v141_v25, 0.0 }
  0xe6   :  { %v143_v27 = vpop.f32.mrf.mxu0 }
  0xe7   :  { %v144_v29 = vadd.f32 %v391_v23, %v143_v27  ;;  %v151_v32 = vsel %vm147_vm1, %v141_v25, %v149_v28 }
  0xe8   :  { %v465_v30 = vpop.f32.mrf.mxu0 }
  0xe9   :  { %vm148_vm2 = vcmp.gt.f32.partialorder %v144_v29, 0.0  ;;  %v150_v31 = vmul.f32 0.01, %v144_v29 }
  0xeb   :  { %v152_v33 = vsel %vm148_vm2, %v144_v29, %v150_v31 }
  0xec   :  { %v153_v34 = vpack.c.bf16 %v152_v33, %v151_v32 }
  0xee   :  { %483 = vmatmul.mubr.bf16.vlgmr.msra.gmra.mxu1 %v153_v34 }
 0x1ae   :  { %v259_v39 = vpop.f32.mrf.mxu1 }
 0x1af   :  { %v260_v40 = vadd.f32 %v401_v38, %v259_v39 }
 0x1b0   :  { %v484_v41 = vpop.f32.mrf.mxu1 }
 0x1b1   :  { %v268_v43 = vmul.f32 0.01, %v260_v40  ;;  %vm266_vm3 = vcmp.gt.f32.partialorder %v260_v40, 0.0 }
 0x1b2   :  { %v262_v42 = vpop.f32.mrf.mxu1 }
 0x1b3   :  { %v263_v44 = vadd.f32 %v401_v38, %v262_v42  ;;  %v270_v47 = vsel %vm266_vm3, %v260_v40, %v268_v43 }
 0x1b4   :  { %v485_v45 = vpop.f32.mrf.mxu1 }
 0x1b5   :  { %vm267_vm4 = vcmp.gt.f32.partialorder %v263_v44, 0.0  ;;  %v269_v46 = vmul.f32 0.01, %v263_v44 }
 0x1b7   :  { %v271_v48 = vsel %vm267_vm4, %v263_v44, %v269_v46 }
 0x1b8   :  { %v272_v49 = vpack.c.bf16 %v271_v48, %v270_v47 }
 0x1ba   :  { %503 = vmatmul.mubr.bf16.vlgmr.msra.gmra.mxu0 %v272_v49 }
 0x27a   :  { %v378_v51 = vpop.f32.mrf.mxu0 }
 0x27b   :  { %v379_v52 = vadd.f32 %v410_v50, %v378_v51 }
 0x27c   :  { %v504_v53 = vpop.f32.mrf.mxu0 }
 0x27d   :  { %385 = vst [vmem:[%s702_s7] sm:$0xff] %v379_v52 }
 0x27e   :  { %v381_v54 = vpop.f32.mrf.mxu0 }
 0x27f   :  { %v382_v55 = vadd.f32 %v410_v50, %v381_v54 }
 0x280   :  { %v505_v56 = vpop.f32.mrf.mxu0 }
 0x281   :  { %386 = vst [vmem:[%s702_s7 + $0x8] sm:$0xff] %v382_v55 }

</bundles_post_ra>
